<compile_context>
chip_gen: v7x
topology: tpu7x:2x2x1
jax: 0.10.0
libtpu: 0.0.40
codegen_flags: <defaults>
</compile_context>

<pallas_src>
import functools

import jax
import jax.numpy as jnp
from jax.experimental import pallas as pl
from jax.experimental.pallas import tpu as pltpu


def _focal_loss_kernel(logits_ref, labels_ref, out_ref, acc_ref, *, n_total, tile_n):
    i = pl.program_id(0)
    num_tiles = pl.num_programs(0)

    @pl.when(i == 0)
    def _init():
        acc_ref[...] = jnp.zeros_like(acc_ref)

    x = logits_ref[...].astype(jnp.float32)            # [tile_n, C]
    labels = labels_ref[...]                            # [tile_n, 1] int32

    # Numerically stable log-softmax pieces (never materialize full softmax).
    m = jnp.max(x, axis=1, keepdims=True)                # [tile_n, 1]
    denom = jnp.sum(jnp.exp(x - m), axis=1, keepdims=True)
    lse = m + jnp.log(denom)                              # logsumexp per row

    # Gather the true-class logit via a one-hot mask (no dynamic gather on TPU
    # vector path). This replaces gather-of-p with gather-of-x.
    col = jax.lax.broadcasted_iota(jnp.int32, x.shape, 1)   # [tile_n, C]
    onehot = (col == labels).astype(jnp.float32)             # [tile_n, C]
    x_t = jnp.sum(x * onehot, axis=1, keepdims=True)         # [tile_n, 1]

    log_pt = x_t - lse                                        # log p_t (<= 0)
    pt = jnp.exp(log_pt)
    loss = -(1.0 - pt) * log_pt                               # [tile_n, 1]

    # Mask padding rows of the (possibly partial) last tile. jnp.where is
    # NaN/Inf-safe even if the out-of-bounds tile region holds garbage.
    row = jax.lax.broadcasted_iota(jnp.int32, (tile_n, 1), 0) + i * tile_n
    loss = jnp.where(row < n_total, loss, 0.0)

    acc_ref[...] += jnp.sum(loss, axis=0, keepdims=True)

    @pl.when(i == num_tiles - 1)
    def _finalize():
        out_ref[...] = acc_ref[...] / jnp.float32(n_total)


def focal_loss(model_output, ground_truth, *, tile_n=None):
    """model_output: [N, C] float (any dtype), ground_truth: [N] int. Returns [1]."""
    N, C = model_output.shape
    itemsize = jnp.dtype(model_output.dtype).itemsize

    if tile_n is None:
        # Keep one logits buffer <= ~8 MiB -> <= ~16 MiB double-buffered:
        # safely inside the default scoped VMEM on v5e/v6e and v7x's 64 MiB.
        budget_bytes = 8 * 1024 * 1024
        rows = max(8, budget_bytes // max(C * itemsize, 1))
        tile_n = max(8, (int(min(1024, rows)) // 8) * 8)
    # Don't make the tile bigger than (N rounded up to a sublane multiple).
    tile_n = min(tile_n, max(8, ((N + 7) // 8) * 8))
    num_tiles = pl.cdiv(N, tile_n)

    # Labels passed as native int32; logits streamed in their native dtype
    # (cast to f32 happens per-tile on the VPU inside the kernel).
    labels2d = ground_truth.astype(jnp.int32).reshape(N, 1)

    kernel = functools.partial(_focal_loss_kernel, n_total=N, tile_n=tile_n)

    cost = pl.CostEstimate(
        flops=int(6 * N * C),
        transcendentals=int(N * C + 3 * N),
        bytes_accessed=int(N * C * itemsize + N * 4 + 4),
    )

    out = pl.pallas_call(
        kernel,
        out_shape=jax.ShapeDtypeStruct((1, 1), jnp.float32),
        grid_spec=pltpu.PrefetchScalarGridSpec(
            num_scalar_prefetch=0,
            grid=(num_tiles,),
            in_specs=[
                pl.BlockSpec((tile_n, C), lambda i: (i, 0)),
                pl.BlockSpec((tile_n, 1), lambda i: (i, 0)),
            ],
            out_specs=pl.BlockSpec((1, 1), lambda i: (0, 0)),
            scratch_shapes=[pltpu.VMEM((1, 1), jnp.float32)],
        ),
        compiler_params=pltpu.CompilerParams(
            dimension_semantics=("arbitrary",),  # reduction axis (resident output)
        ),
        cost_estimate=cost,
    )(model_output, labels2d)
    return out.reshape(1)


def _reference(model_output, ground_truth):
    # Pure-JAX reference mirroring the PyTorch module.
    p = jax.nn.softmax(model_output.astype(jnp.float32), axis=1)
    pt = jnp.take_along_axis(p, ground_truth.reshape(-1, 1), axis=1)
    loss = -(1.0 - pt) * jnp.log(pt)
    return jnp.sum(loss, axis=0) / loss.shape[0]


if __name__ == "__main__":
    key = jax.random.PRNGKey(0)
    k1, k2, k3, k4 = jax.random.split(key, 4)

    # Small shapes consistent with the module: batch=8, classes=32.
    N, C = 8, 32
    model_output = jax.random.normal(k1, (N, C), dtype=jnp.float32)
    ground_truth = jax.random.randint(k2, (N,), 0, C, dtype=jnp.int32)

    out = focal_loss(model_output, ground_truth)
    jax.block_until_ready(out)

    ref = _reference(model_output, ground_truth)
    assert out.shape == (1,)
    assert jnp.allclose(out, ref, atol=1e-5, rtol=1e-5), (out, ref)

    # Second check: N not a multiple of the tile -> exercises the grid + mask path.
    N2, C2 = 13, 32
    mo2 = jax.random.normal(k3, (N2, C2), dtype=jnp.float32)
    gt2 = jax.random.randint(k4, (N2,), 0, C2, dtype=jnp.int32)
    out2 = focal_loss(mo2, gt2, tile_n=8)
    jax.block_until_ready(out2)
    ref2 = _reference(mo2, gt2)
    assert jnp.allclose(out2, ref2, atol=1e-5, rtol=1e-5), (out2, ref2)

    print("KERNEL_OK")
</pallas_src>

<mosaic_0001>
module attributes {stable_mosaic.version = 11 : i64} {
  func.func @_focal_loss_kernel(%arg0: i32, %arg1: memref<8x32xf32, #tpu.memory_space<vmem>>, %arg2: memref<8x1xi32, #tpu.memory_space<vmem>>, %arg3: memref<1x1xf32, #tpu.memory_space<vmem>>, %arg4: memref<1x1xf32, #tpu.memory_space<vmem>>) attributes {dimension_semantics = [#tpu.dimension_semantics<arbitrary>], iteration_bounds = array<i64: 1>, scalar_prefetch = 0 : i64, scratch_operands = 1 : i64, tpu.core_type = #tpu.core_type<tc>, window_params = [{transform_indices = @transform_0, window_bounds = array<i64: 8, 32>}, {transform_indices = @transform_1, window_bounds = array<i64: 8, 1>}, {pipeline_mode = #tpu.pipeline_mode<synchronous>, transform_indices = @transform_2, window_bounds = array<i64: 1, 1>}]} {
    %c0_i32 = arith.constant 0 : i32
    %0 = arith.cmpi eq, %arg0, %c0_i32 : i32
    %1 = arith.extui %0 : i1 to i32
    %c0_i32_0 = arith.constant 0 : i32
    %2 = arith.cmpi ne, %1, %c0_i32_0 : i32
    scf.if %2 {
      %cst_17 = arith.constant 0.000000e+00 : f32
      %45 = vector.broadcast %cst_17 : f32 to vector<1x1xf32>
      %c0_18 = arith.constant 0 : index
      %c0_19 = arith.constant 0 : index
      %46 = vector.load %arg4[%c0_18, %c0_19] : memref<1x1xf32, #tpu.memory_space<vmem>>, vector<1x1xf32>
      tpu.vector_store %arg4[%c0_18, %c0_19], %45 {strides = array<i32>} : memref<1x1xf32, #tpu.memory_space<vmem>>, vector<1x1xf32>,
    } else {
    }
    %c0 = arith.constant 0 : index
    %c0_1 = arith.constant 0 : index
    %3 = vector.load %arg1[%c0, %c0_1] : memref<8x32xf32, #tpu.memory_space<vmem>>, vector<8x32xf32>
    %c0_2 = arith.constant 0 : index
    %c0_3 = arith.constant 0 : index
    %4 = vector.load %arg2[%c0_2, %c0_3] : memref<8x1xi32, #tpu.memory_space<vmem>>, vector<8x1xi32>
    %cst = arith.constant dense<0xFF800000> : vector<8xf32>
    %5 = vector.multi_reduction <maximumf>, %3, %cst [1] : vector<8x32xf32> to vector<8xf32>
    %6 = vector.shape_cast %5 : vector<8xf32> to vector<8x1xf32>
    %7 = vector.broadcast %6 : vector<8x1xf32> to vector<8x32xf32>
    %8 = arith.subf %3, %7 : vector<8x32xf32>
    %9 = math.exp %8 : vector<8x32xf32>
    %cst_4 = arith.constant dense<0.000000e+00> : vector<8xf32>
    %10 = vector.multi_reduction <add>, %9, %cst_4 [1] : vector<8x32xf32> to vector<8xf32>
    %11 = vector.shape_cast %10 : vector<8xf32> to vector<8x1xf32>
    %12 = math.log %11 : vector<8x1xf32>
    %13 = arith.addf %6, %12 : vector<8x1xf32>
    %14 = tpu.iota {dimensions = array<i32: 1>} : vector<8x32xi32>
    %15 = vector.broadcast %4 : vector<8x1xi32> to vector<8x32xi32>
    %16 = arith.cmpi eq, %14, %15 : vector<8x32xi32>
    %17 = arith.extui %16 : vector<8x32xi1> to vector<8x32xi32>
    %18 = arith.sitofp %17 : vector<8x32xi32> to vector<8x32xf32>
    %19 = arith.mulf %3, %18 : vector<8x32xf32>
    %cst_5 = arith.constant dense<0.000000e+00> : vector<8xf32>
    %20 = vector.multi_reduction <add>, %19, %cst_5 [1] : vector<8x32xf32> to vector<8xf32>
    %21 = vector.shape_cast %20 : vector<8xf32> to vector<8x1xf32>
    %22 = arith.subf %21, %13 : vector<8x1xf32>
    %23 = math.exp %22 : vector<8x1xf32>
    %cst_6 = arith.constant 1.000000e+00 : f32
    %24 = vector.broadcast %cst_6 : f32 to vector<8x1xf32>
    %25 = arith.subf %24, %23 : vector<8x1xf32>
    %cst_7 = arith.constant 0.000000e+00 : f32
    %26 = vector.broadcast %cst_7 : f32 to vector<8x1xf32>
    %27 = arith.subf %26, %25 : vector<8x1xf32>
    %28 = arith.mulf %27, %22 : vector<8x1xf32>
    %29 = tpu.iota {dimensions = array<i32: 0>} : vector<8x1xi32>
    %c8_i32 = arith.constant 8 : i32
    %30 = arith.muli %arg0, %c8_i32 : i32
    %31 = vector.broadcast %30 : i32 to vector<8x1xi32>
    %32 = arith.addi %29, %31 : vector<8x1xi32>
    %c8_i32_8 = arith.constant 8 : i32
    %33 = vector.broadcast %c8_i32_8 : i32 to vector<8x1xi32>
    %34 = arith.cmpi slt, %32, %33 : vector<8x1xi32>
    %cst_9 = arith.constant 0.000000e+00 : f32
    %35 = vector.broadcast %cst_9 : f32 to vector<8x1xf32>
    %36 = arith.select %34, %28, %35 : vector<8x1xi1>, vector<8x1xf32>
    %c0_10 = arith.constant 0 : index
    %c0_11 = arith.constant 0 : index
    %37 = vector.load %arg4[%c0_10, %c0_11] : memref<1x1xf32, #tpu.memory_space<vmem>>, vector<1x1xf32>
    %cst_12 = arith.constant dense<0.000000e+00> : vector<1xf32>
    %38 = vector.multi_reduction <add>, %36, %cst_12 [0] : vector<8x1xf32> to vector<1xf32>
    %39 = vector.shape_cast %38 : vector<1xf32> to vector<1x1xf32>
    %40 = arith.addf %37, %39 : vector<1x1xf32>
    %c0_13 = arith.constant 0 : index
    %c0_14 = arith.constant 0 : index
    %41 = vector.load %arg4[%c0_13, %c0_14] : memref<1x1xf32, #tpu.memory_space<vmem>>, vector<1x1xf32>
    tpu.vector_store %arg4[%c0_13, %c0_14], %40 {strides = array<i32>} : memref<1x1xf32, #tpu.memory_space<vmem>>, vector<1x1xf32>,
    %c0_i32_15 = arith.constant 0 : i32
    %42 = arith.cmpi eq, %arg0, %c0_i32_15 : i32
    %43 = arith.extui %42 : i1 to i32
    %c0_i32_16 = arith.constant 0 : i32
    %44 = arith.cmpi ne, %43, %c0_i32_16 : i32
    scf.if %44 {
      %c0_17 = arith.constant 0 : index
      %c0_18 = arith.constant 0 : index
      %45 = vector.load %arg4[%c0_17, %c0_18] : memref<1x1xf32, #tpu.memory_space<vmem>>, vector<1x1xf32>
      %cst_19 = arith.constant 8.000000e+00 : f32
      %46 = vector.broadcast %cst_19 : f32 to vector<1x1xf32>
      %47 = arith.divf %45, %46 : vector<1x1xf32>
      %c0_20 = arith.constant 0 : index
      %c0_21 = arith.constant 0 : index
      %48 = vector.load %arg3[%c0_20, %c0_21] : memref<1x1xf32, #tpu.memory_space<vmem>>, vector<1x1xf32>
      tpu.vector_store %arg3[%c0_20, %c0_21], %47 {strides = array<i32>} : memref<1x1xf32, #tpu.memory_space<vmem>>, vector<1x1xf32>,
    } else {
    }
    return
  }
  func.func @transform_0(%arg0: i32) -> (i32, i32) {
    %c0_i32 = arith.constant 0 : i32
    %c0_i32_0 = arith.constant 0 : i32
    return %arg0, %c0_i32 : i32, i32
  }
  func.func @transform_1(%arg0: i32) -> (i32, i32) {
    %c0_i32 = arith.constant 0 : i32
    %c0_i32_0 = arith.constant 0 : i32
    return %arg0, %c0_i32 : i32, i32
  }
  func.func @transform_2(%arg0: i32) -> (i32, i32) {
    %c0_i32 = arith.constant 0 : i32
    %c0_i32_0 = arith.constant 0 : i32
    %c0_i32_1 = arith.constant 0 : i32
    return %c0_i32, %c0_i32_0 : i32, i32
  }
}

</mosaic_0001>

<bundles_post_ra>
// kernel: tpu_custom_call.1
= control target key start
LH: loop header
LB: loop body
LE: loop exit
PB: predicated region body
PF: predicated region fallthrough
CT: control target
= control target key end

     0   :  { %vm20_vm0 = vcmask 261120   ;;  %s166_s0 = inlined_call_operand.vmem [shape: f32[8,32], index: 0, kind: input, shape index: {}]   ;;  %s167_s1 = inlined_call_operand.vmem [shape: s32[8,1], index: 1, kind: input, shape index: {}]   ;;  %s168_s2 = inlined_call_operand.hbm [shape: f32[1,1], index: 2, kind: output, shape index: {}]  }
   0x1   :  { %v18_v0 = vld [vmem:[%s166_s0] sm:$0xff] }
   0x2   :  { %7 = vsyncpa [#allocation4], 0  ;;  %v21_v1 = vsel %vm20_vm0, %v18_v0, -inf  ;;  %v124_v2 = vmov 0   ;;  %v19_v3 = vld [vmem:[%s167_s1] sm:$0xff]  ;;  %vm16_vm1 = vcmask 0   ;;  %v33_v7 = vlaneseq }
   0x3   :  { %93 = vset.pattern.permute.xlu0 %v124_v2  ;;  %v125_v4 = vmov 0.0   ;;  %s126_s0 = smov [#allocation3]  }
   0x4   :  { %22 = vmax.xlane.f32.xlu0 %v21_v1  ;;  %17 = vst.msk [vmem:[#allocation2] sm:$0x1] %vm16_vm1, %v125_v4  ;;  %v34_v9 = vand.u32 127, %v33_v7  ;;  %s81_s1 = sshll.u32 %s126_s0, 4  ;;  %s82_s1 = int_to_ptr.vmem [resolvable:$true] %s81_s1 }
   0x5   :  { %s100_s13 = scalar_lea.vmem %s82_s1, 16  ;;  %s104_s14 = scalar_lea.vmem %s82_s1, 32 }
   0x6   :  { %p101_p0 = scmp.ne.s32.totalorder %s82_s1, %s100_s13  ;;  %p105_p1 = scmp.lt.s32.totalorder %s82_s1, %s82_s1 }
   0x7   :  { %p106_p2 = scmp.lt.s32.totalorder %s104_s14, %s100_s13 }
   0x9   :  { %p107_p3 = por %p106_p2, %p105_p1 }
   0xb   :  { %v58_v32 = vld [vmem:[#allocation2] sm:$0x1]  ;;  %p108_p4 = pnand %p107_p3, %p101_p0 }
  0x1a   :  { %36 = vperm.xlu0 %93, %v19_v3  }
  0x91   :  { %v23_v5 = vpop.xlane.xlu0 %22 }
  0x92   :  { %v24_v6 = vsub.f32 %v18_v0, %v23_v5 }
  0x94   :  { %v25_v8 = vmul.f32 1.442695, %v24_v6 }
  0x96   :  { %94 = vpow2.f32 %v25_v8 }
  0x99   :  { %v37_v10 = vpop.permute.xlu0 %36 }
  0x9a   :  { %vm38_vm2 = vcmp.eq.s32.totalorder %v34_v9, %v37_v10 }
  0x9b   :  { %v89_v11 = vsel %vm38_vm2, 1.0, %v125_v4 }
  0x9c   :  { %v41_v12 = vmul.f32 %v89_v11, %v18_v0 }
  0x9e   :  { %v42_v15 = vsel %vm20_vm0, %v41_v12, 0.0 }
  0xa0   :  { %v95_v13 = vpop.eup %94 }
  0xa1   :  { %v27_v14 = vsel %vm20_vm0, %v95_v13, 0.0 }
  0xa2   :  { %28 = vadd.xlane.f32.xlu1 %v27_v14 }
  0xa6   :  { %43 = vadd.xlane.f32.xlu1 %v42_v15 }
 0x12f   :  { %v29_v16 = vpop.xlane.xlu1 %28 }
 0x130   :  { %96 = vlog2.f32 %v29_v16 }
 0x133   :  { %v44_v19 = vpop.xlane.xlu1 %43 }
 0x13a   :  { %v97_v17 = vpop.eup %96 }
 0x13b   :  { %v31_v18 = vmul.f32 0.6931472, %v97_v17 }
 0x13d   :  { %v32_v20 = vadd.f32 %v31_v18, %v23_v5 }
 0x13f   :  { %v45_v21 = vsub.f32 %v44_v19, %v32_v20 }
 0x141   :  { %v46_v22 = vmul.f32 1.442695, %v45_v21 }
 0x143   :  { %98 = vpow2.f32 %v46_v22 }
 0x14d   :  { %v99_v23 = vpop.eup %98 }
 0x14e   :  { %v48_v24 = vsub.f32 1.0, %v99_v23 }
 0x150   :  { %v49_v25 = vsub.f32 0.0, %v48_v24 }
 0x152   :  { %v50_v26 = vmul.f32 %v49_v25, %v45_v21 }
 0x154   :  { %v59_v27 = vrot.slane %v50_v26, 4 }
 0x156   :  { %v60_v28 = vadd.f32 %v59_v27, %v50_v26 }
 0x158   :  { %v61_v29 = vrot.slane %v60_v28, 2 }
 0x15a   :  { %v62_v30 = vadd.f32 %v61_v29, %v60_v28 }
 0x15c   :  { %v63_v31 = vrot.slane %v62_v30, 1 }
 0x15e   :  { %v64_v33 = vadd.f32 %v63_v31, %v62_v30 }
 0x160   :  { %v65_v34 = vadd.f32 %v64_v33, %v58_v32 }
 0x162   :  { %67 = vst.msk [vmem:[#allocation2] sm:$0x1] %vm16_vm1, %v65_v34 }
 0x169   :  { %v71_v35 = vld [vmem:[#allocation2] sm:$0x1] }
 0x16a   :  { %v73_v36 = vmul.f32 0.125, %v71_v35 }
 0x16c   :  { %74 = vst.msk [vmem:[#allocation3] sm:$0x1] %vm16_vm1, %v73_v36 }
 0x16d   :  { %111 = shalt.err (!%p108_p4)
}
 0x16e   :  { %s112_s17 = scalar_lea.hbm %s168_s2, 16 }
 0x16f   :  { %p113_p5 = scmp.ne.s32.totalorder %s168_s2, %s112_s17  ;;  %p116_p6 = scmp.lt.u32.totalorder %s112_s17, %s168_s2 }
 0x171   :  { %p118_p7 = pnand %p116_p6, %p113_p5 }
 0x173   :  { %121 = shalt.err (!%p118_p7)
}
 0x174   :  { %84 = dma.vmem_to_hbm [thread:$0]  %s82_s1, 16, %s168_s2, [#allocation4]  }
 0x175   :  { %122 = dma.done.wait [#allocation4], 16  }
 0x176   :  { %123 = vsyncadd [#allocation4], 4294967280 }
 0x177   :  { %88 = vsyncpa [#allocation4], 1 }

</bundles_post_ra>
